<compile_context>
chip_gen: v7x
topology: tpu7x:2x2x1
jax: 0.10.0
libtpu: 0.0.40
codegen_flags: <defaults>
</compile_context>

<pallas_src>
import functools

import jax
import jax.numpy as jnp
from jax.experimental import pallas as pl
from jax.experimental.pallas import tpu as pltpu


_NUM_SHARDS = 2                       # v7x has 2 TCs; no-op on v5e/v6e
_MAX_TILE_BYTES = 2 * 1024 * 1024     # per-input tile cap (fits all scoped VMEM defaults)


def _round_up(x, m):
    return (x + m - 1) // m * m


def _focal_loss_kernel(x_ref, t_ref, out_ref, *, gamma, n_valid, block_rows,
                       needs_mask):
    i = pl.program_id(1)
    n_steps = pl.num_programs(1)

    # Zero the per-shard VMEM-resident accumulator at the start of the
    # reduction ("arbitrary") axis.
    @pl.when(i == 0)
    def _():
        out_ref[...] = jnp.zeros_like(out_ref)

    x = x_ref[...].astype(jnp.float32)
    t = t_ref[...].astype(jnp.float32)

    # Numerically stable BCEWithLogitsLoss (reduction='none'):
    #   bce = max(x, 0) - x * t + log1p(exp(-|x|))
    bce = jnp.maximum(x, 0.0) - x * t + jnp.log1p(jnp.exp(-jnp.abs(x)))

    # pt = exp(-bce); focal = (1 - pt)^gamma * bce
    pt = jnp.exp(-bce)
    one_minus_pt = 1.0 - pt
    if gamma == 2.0:
        # Module default: avoid float-exponent pow (2 extra EUP transcendentals
        # per element) and its NaN edge case when 1 - pt is slightly negative.
        mod = jnp.square(one_minus_pt)
    elif float(gamma).is_integer() and 0 <= int(gamma) <= 8:
        mod = jnp.ones_like(one_minus_pt)
        for _ in range(int(gamma)):
            mod = mod * one_minus_pt
    else:
        mod = jnp.power(jnp.maximum(one_minus_pt, 0.0), gamma)

    focal = mod * bce

    if needs_mask:
        # Zero out padded rows; padding is not free for this loss.
        p = pl.program_id(0)
        row0 = (p * n_steps + i) * block_rows
        rows = row0 + jax.lax.broadcasted_iota(jnp.int32, focal.shape, 0)
        focal = jnp.where(rows < n_valid, focal, 0.0)

    # Fold the (block_rows, c) tile into an (8, c) partial using pure VPU adds
    # (the reshape splits the sublane-major axis; no cross-lane reduce here).
    c = focal.shape[1]
    partial = focal.reshape(block_rows // 8, 8, c).sum(axis=0)
    out_ref[...] += partial[jnp.newaxis]


def focal_loss(logits, targets, gamma=2.0, reduction="mean", block_rows=None):
    """Pallas TPU focal loss matching the PyTorch FocalLoss module."""
    assert logits.shape == targets.shape
    n, c = logits.shape

    # Pick a large, VMEM-safe row tile: 2 inputs x 2 pipeline buffers x tile
    # stays around 8 MiB, inside every generation's default scoped VMEM
    # (v5e 16 MiB / v6e 32 MiB / v7x 32 MiB).
    max_rows_by_vmem = max(8, (_MAX_TILE_BYTES // (4 * c)) // 8 * 8)
    if block_rows is None:
        block_rows = 4096
    block_rows = _round_up(block_rows, 8)
    block_rows = min(block_rows, max_rows_by_vmem, _round_up(n, 8))

    rows_padded = _round_up(n, _NUM_SHARDS * block_rows)
    steps_per_shard = rows_padded // (_NUM_SHARDS * block_rows)
    needs_mask = rows_padded != n

    if needs_mask:
        pad = rows_padded - n
        logits = jnp.pad(logits, ((0, pad), (0, 0)))
        targets = jnp.pad(targets, ((0, pad), (0, 0)))

    kernel = functools.partial(
        _focal_loss_kernel, gamma=gamma, n_valid=n, block_rows=block_rows,
        needs_mask=needs_mask)

    in_map = lambda p, i: (p * steps_per_shard + i, 0)

    partials = pl.pallas_call(
        kernel,
        out_shape=jax.ShapeDtypeStruct((_NUM_SHARDS, 8, c), jnp.float32),
        grid_spec=pltpu.PrefetchScalarGridSpec(
            num_scalar_prefetch=0,
            grid=(_NUM_SHARDS, steps_per_shard),
            in_specs=[
                pl.BlockSpec((block_rows, c), in_map),
                pl.BlockSpec((block_rows, c), in_map),
            ],
            out_specs=pl.BlockSpec((1, 8, c), lambda p, i: (p, 0, 0)),
        ),
        compiler_params=pltpu.CompilerParams(
            dimension_semantics=("parallel", "arbitrary"),
        ),
        cost_estimate=pl.CostEstimate(
            flops=10 * n * c,
            transcendentals=3 * n * c,
            bytes_accessed=2 * 4 * n * c + _NUM_SHARDS * 8 * c * 4,
        ),
    )(logits, targets)

    total = jnp.sum(partials)
    if reduction == "mean":
        return total / jnp.float32(n * c)
    elif reduction == "sum":
        return total
    else:
        # TODO(synk): reduction='none' would need an elementwise output spec;
        # only 'mean'/'sum' are wired here (module default is 'mean').
        raise NotImplementedError("reduction='none' not wired in this wrapper")


def _reference_focal_loss(logits, targets, gamma=2.0, reduction="mean"):
    bce = (jnp.maximum(logits, 0.0) - logits * targets
           + jnp.log1p(jnp.exp(-jnp.abs(logits))))
    pt = jnp.exp(-bce)
    focal = (1.0 - pt) ** gamma * bce
    if reduction == "mean":
        return jnp.mean(focal)
    return jnp.sum(focal)


if __name__ == "__main__":
    key = jax.random.PRNGKey(0)
    k1, k2, k3, k4 = jax.random.split(key, 4)

    # Test 1: aligned small shape, mean reduction (module default).
    n1, c1 = 16, 128
    x1 = jax.random.normal(k1, (n1, c1), dtype=jnp.float32) * 2.0
    t1 = (jax.random.uniform(k2, (n1, c1)) > 0.5).astype(jnp.float32)
    out1 = jax.block_until_ready(focal_loss(x1, t1, gamma=2.0, reduction="mean"))
    ref1 = _reference_focal_loss(x1, t1, gamma=2.0, reduction="mean")
    assert jnp.allclose(out1, ref1, atol=1e-5, rtol=1e-5), (out1, ref1)

    # Test 2: ragged batch (exercises padding + in-kernel masking), sum reduction.
    n2, c2 = 37, 128
    x2 = jax.random.normal(k3, (n2, c2), dtype=jnp.float32) * 3.0
    t2 = (jax.random.uniform(k4, (n2, c2)) > 0.5).astype(jnp.float32)
    out2 = jax.block_until_ready(focal_loss(x2, t2, gamma=2.0, reduction="sum"))
    ref2 = _reference_focal_loss(x2, t2, gamma=2.0, reduction="sum")
    assert jnp.allclose(out2, ref2, atol=1e-3, rtol=1e-5), (out2, ref2)

    print("KERNEL_OK")
</pallas_src>

<mosaic_0001>
module attributes {stable_mosaic.version = 11 : i64} {
  func.func @_focal_loss_kernel(%arg0: i32, %arg1: i32, %arg2: memref<16x128xf32, #tpu.memory_space<vmem>>, %arg3: memref<16x128xf32, #tpu.memory_space<vmem>>, %arg4: memref<1x8x128xf32, #tpu.memory_space<vmem>>) attributes {dimension_semantics = [#tpu.dimension_semantics<parallel>, #tpu.dimension_semantics<arbitrary>], iteration_bounds = array<i64: 2, 1>, scalar_prefetch = 0 : i64, scratch_operands = 0 : i64, tpu.core_type = #tpu.core_type<tc>, window_params = [{transform_indices = @transform_0, window_bounds = array<i64: 16, 128>}, {transform_indices = @transform_1, window_bounds = array<i64: 16, 128>}, {transform_indices = @transform_2, window_bounds = array<i64: 1, 8, 128>}]} {
    %c0_i32 = arith.constant 0 : i32
    %0 = arith.cmpi eq, %arg1, %c0_i32 : i32
    %1 = arith.extui %0 : i1 to i32
    %c0_i32_0 = arith.constant 0 : i32
    %2 = arith.cmpi ne, %1, %c0_i32_0 : i32
    scf.if %2 {
      %cst_16 = arith.constant 0.000000e+00 : f32
      %38 = vector.broadcast %cst_16 : f32 to vector<1x8x128xf32>
      %c0_17 = arith.constant 0 : index
      %c0_18 = arith.constant 0 : index
      %c0_19 = arith.constant 0 : index
      %39 = vector.load %arg4[%c0_17, %c0_18, %c0_19] : memref<1x8x128xf32, #tpu.memory_space<vmem>>, vector<1x8x128xf32>
      tpu.vector_store %arg4[%c0_17, %c0_18, %c0_19], %38 {strides = array<i32>} : memref<1x8x128xf32, #tpu.memory_space<vmem>>, vector<1x8x128xf32>,
    } else {
    }
    %c0 = arith.constant 0 : index
    %c0_1 = arith.constant 0 : index
    %3 = vector.load %arg2[%c0, %c0_1] : memref<16x128xf32, #tpu.memory_space<vmem>>, vector<16x128xf32>
    %c0_2 = arith.constant 0 : index
    %c0_3 = arith.constant 0 : index
    %4 = vector.load %arg3[%c0_2, %c0_3] : memref<16x128xf32, #tpu.memory_space<vmem>>, vector<16x128xf32>
    %cst = arith.constant 0.000000e+00 : f32
    %5 = vector.broadcast %cst : f32 to vector<16x128xf32>
    %6 = arith.maximumf %3, %5 : vector<16x128xf32>
    %7 = arith.mulf %3, %4 : vector<16x128xf32>
    %8 = arith.subf %6, %7 : vector<16x128xf32>
    %9 = math.absf %3 : vector<16x128xf32>
    %cst_4 = arith.constant 0.000000e+00 : f32
    %10 = vector.broadcast %cst_4 : f32 to vector<16x128xf32>
    %11 = arith.subf %10, %9 : vector<16x128xf32>
    %12 = math.exp %11 : vector<16x128xf32>
    %13 = math.log1p %12 : vector<16x128xf32>
    %14 = arith.addf %8, %13 : vector<16x128xf32>
    %cst_5 = arith.constant 0.000000e+00 : f32
    %15 = vector.broadcast %cst_5 : f32 to vector<16x128xf32>
    %16 = arith.subf %15, %14 : vector<16x128xf32>
    %17 = math.exp %16 : vector<16x128xf32>
    %cst_6 = arith.constant 1.000000e+00 : f32
    %18 = vector.broadcast %cst_6 : f32 to vector<16x128xf32>
    %19 = arith.subf %18, %17 : vector<16x128xf32>
    %20 = arith.mulf %19, %19 : vector<16x128xf32>
    %21 = arith.mulf %20, %14 : vector<16x128xf32>
    %c1_i32 = arith.constant 1 : i32
    %22 = arith.muli %arg0, %c1_i32 : i32
    %23 = arith.addi %22, %arg1 : i32
    %c16_i32 = arith.constant 16 : i32
    %24 = arith.muli %23, %c16_i32 : i32
    %25 = tpu.iota {dimensions = array<i32: 0>} : vector<16x128xi32>
    %26 = vector.broadcast %24 : i32 to vector<16x128xi32>
    %27 = arith.addi %26, %25 : vector<16x128xi32>
    %c16_i32_7 = arith.constant 16 : i32
    %28 = vector.broadcast %c16_i32_7 : i32 to vector<16x128xi32>
    %29 = arith.cmpi slt, %27, %28 : vector<16x128xi32>
    %cst_8 = arith.constant 0.000000e+00 : f32
    %30 = vector.broadcast %cst_8 : f32 to vector<16x128xf32>
    %31 = arith.select %29, %21, %30 : vector<16x128xi1>, vector<16x128xf32>
    %32 = vector.shape_cast %31 : vector<16x128xf32> to vector<2x8x128xf32>
    %cst_9 = arith.constant dense<0.000000e+00> : vector<8x128xf32>
    %33 = vector.multi_reduction <add>, %32, %cst_9 [0] : vector<2x8x128xf32> to vector<8x128xf32>
    %c0_10 = arith.constant 0 : index
    %c0_11 = arith.constant 0 : index
    %c0_12 = arith.constant 0 : index
    %34 = vector.load %arg4[%c0_10, %c0_11, %c0_12] : memref<1x8x128xf32, #tpu.memory_space<vmem>>, vector<1x8x128xf32>
    %35 = vector.shape_cast %33 : vector<8x128xf32> to vector<1x8x128xf32>
    %36 = arith.addf %34, %35 : vector<1x8x128xf32>
    %c0_13 = arith.constant 0 : index
    %c0_14 = arith.constant 0 : index
    %c0_15 = arith.constant 0 : index
    %37 = vector.load %arg4[%c0_13, %c0_14, %c0_15] : memref<1x8x128xf32, #tpu.memory_space<vmem>>, vector<1x8x128xf32>
    tpu.vector_store %arg4[%c0_13, %c0_14, %c0_15], %36 {strides = array<i32>} : memref<1x8x128xf32, #tpu.memory_space<vmem>>, vector<1x8x128xf32>,
    return
  }
  func.func @transform_0(%arg0: i32, %arg1: i32) -> (i32, i32) {
    %c1_i32 = arith.constant 1 : i32
    %0 = arith.muli %arg0, %c1_i32 : i32
    %1 = arith.addi %0, %arg1 : i32
    %c0_i32 = arith.constant 0 : i32
    %c0_i32_0 = arith.constant 0 : i32
    return %1, %c0_i32 : i32, i32
  }
  func.func @transform_1(%arg0: i32, %arg1: i32) -> (i32, i32) {
    %c1_i32 = arith.constant 1 : i32
    %0 = arith.muli %arg0, %c1_i32 : i32
    %1 = arith.addi %0, %arg1 : i32
    %c0_i32 = arith.constant 0 : i32
    %c0_i32_0 = arith.constant 0 : i32
    return %1, %c0_i32 : i32, i32
  }
  func.func @transform_2(%arg0: i32, %arg1: i32) -> (i32, i32, i32) {
    %c0_i32 = arith.constant 0 : i32
    %c0_i32_0 = arith.constant 0 : i32
    %c0_i32_1 = arith.constant 0 : i32
    return %arg0, %c0_i32, %c0_i32_0 : i32, i32, i32
  }
}

</mosaic_0001>

<bundles_post_ra>
// kernel: tpu_custom_call.1
= control target key start
LH: loop header
LB: loop body
LE: loop exit
PB: predicated region body
PF: predicated region fallthrough
CT: control target
= control target key end

     0   :  { %7 = vsyncpa [#allocation3], 0  ;;  %s919_s0 = inlined_call_operand.hbm [shape: f32[32,128], index: 0, kind: input, shape index: {}]   ;;  %s920_s1 = inlined_call_operand.hbm [shape: f32[32,128], index: 1, kind: input, shape index: {}]   ;;  %s921_s2 = inlined_call_operand.hbm [shape: f32[2,8,128], index: 2, kind: output, shape index: {}]  }
   0x1   :  { %9 = vsyncpa [#allocation3 + $0x1], 0 }
   0x2   :  { %10 = vsyncpa [#allocation6], 0 }
   0x3   :  { %12 = vsyncpa [#allocation6 + $0x1], 0 }
   0x4   :  { %13 = vsyncpa [#allocation4], 0 }
   0x5   :  { %15 = vsyncpa [#allocation4 + $0x1], 0  ;;  %s683_s9 = smov 0   ;;  %s685_s10 = smov 0  }
   0x6   :  { %s687_s11 = smov 0   ;;  %s689_s12 = smov 0  }
   0x7   :  { %s691_s13 = smov 0   ;;  %s693_s14 = smov 0  }
   0x8 LB: > { %s412_s15 = sadd.s32 4294967295, %s661_s14   ;;  %s413_s16 = sadd.s32 4294967294, %s661_s14   ;;  %s661_s14 = sphi %s693_s14, %s21_s14   ;;  %s657_s13 = sphi %s691_s13, %s939_s13   ;;  %s653_s12 = sphi %s689_s12, %s938_s12   ;;  %s649_s11 = sphi %s687_s11, %s937_s11   ;;  %s645_s10 = sphi %s685_s10, %s936_s10   ;;  %s641_s9 = sphi %s683_s9, %s935_s9  }
   0x9   : > { %s33_s17 = sadd.s32 1, %s657_s13  ;;  %s42_s18 = sadd.s32 1, %s649_s11 }
   0xa   : > { %p35_p0 = scmp.ge.s32.totalorder %s33_s17, 2  ;;  %p49_p1 = scmp.ne.s32.totalorder %s649_s11, %s645_s10 }
   0xb   : > { %p50_p2 = scmp.eq.s32.totalorder %s661_s14, 0  ;;  %p55_p3 = scmp.ne.s32.totalorder %s645_s10, %s641_s9 }
   0xc   : > { %s941_s17 = smov (%p35_p0, %s33_s17), 0  ;;  %p56_p5 = scmp.eq.s32.totalorder %s412_s15, 0 }
   0xd   : > { %p724_p4 = por %p50_p2, %p49_p1  ;;  %s39_s20 = ssub.s32 %s657_s13, %s941_s17 }
   0xe   : > { %p107_p6 = scmp.eq.s32.totalorder %s412_s15, 1  ;;  %p40_p7 = scmp.eq.s32.totalorder %s39_s20, 0 }
   0xf   : > { %p730_p8 = por %p56_p5, %p55_p3  ;;  %p113_p10 = scmp.eq.s32.totalorder %s413_s16, 1 }
  0x10   : > { %p734_p9 = por %p107_p6, %p49_p1  ;;  %p450_p13 = scmp.lt.s32.totalorder %s661_s14, 2 }
  0x11   : > { %s925_s21 = scalar_select %p730_p8, 1, 0 }
  0x12   : > { %s926_s22 = scalar_select %p734_p9, 1, 0 }
  0x13   : > { %s739_s23 = scalar_select %p40_p7, %s649_s11, %s42_s18  }
  0x14   : > { %p741_p11 = por %p113_p10, %p55_p3  ;;  %s748_s25 = sand.u32 1, %s649_s11  }
  0x15   : > { %s416_s26 = sshll.u32 %s748_s25, 4  ;;  %s431_s27 = sshll.u32 %s657_s13, 8 }
  0x16   : > { %s927_s24 = scalar_select %p741_p11, 1, 0 }
  0x17   : > { %s757_s30 = scalar_lea.hbm %s919_s0, %s431_s27  ;;  %s137_s3 = scalar_lea.vmem [#allocation2], %s416_s26 }
  0x18   : > { %s145_s4 = sshll.u32 %s137_s3, 4  ;;  %p765_p0 = pnand %p450_p13, %p724_p4  ;;  %s761_s4 = int_to_ptr.vmem [resolvable:$true] %s145_s4 }
  0x19   : > { %s134_s6 = scalar_lea.sflag [#allocation3], %s748_s25  ;;  %s515_s7 = scalar_lea.hbm %s757_s30, 256 }
  0x1a   : > { %p516_p2 = scmp.ne.s32.totalorder %s757_s30, %s515_s7  ;;  %p517_p3 = pneg %p765_p0 }
  0x1b   : > { %s520_s16 = scalar_lea.hbm %s919_s0, 512  ;;  %p521_p4 = scmp.lt.u32.totalorder %s757_s30, %s919_s0 }
  0x1c   : > { %p518_p5 = pnand %p517_p3, %p516_p2  ;;  %p522_p7 = scmp.lt.u32.totalorder %s520_s16, %s515_s7 }
  0x1d   : > { %p524_p13 = scmp.lt.u32.totalorder %s515_s7, %s757_s30 }
  0x1e   : > { %p519_p6 = pneg %p518_p5  ;;  %p523_p10 = por %p522_p7, %p521_p4 }
  0x20   : > { %p525_p12 = por %p524_p13, %p523_p10 }
  0x22   : > { %p526_p1 = pnand %p525_p12, %p519_p6 }
  0x24   : > { %529 = shalt.err (!%p526_p1)
}
  0x25   : > { %s530_s20 = scalar_lea.vmem %s761_s4, 256  ;;  %s663_s28 = smov [#allocation2]  }
  0x26   : > { %p531_p2 = scmp.ne.s32.totalorder %s761_s4, %s530_s20  ;;  %s535_s29 = sshll.u32 %s663_s28, 4  ;;  %s536_s29 = int_to_ptr.vmem [resolvable:$false] %s535_s29 }
  0x27   : > { %s537_s3 = scalar_lea.vmem %s536_s29, 512  ;;  %p538_p9 = scmp.lt.s32.totalorder %s761_s4, %s536_s29 }
  0x28   : > { %p533_p5 = pnand %p531_p2, %p517_p3  ;;  %p539_p4 = scmp.lt.s32.totalorder %s537_s3, %s530_s20 }
  0x2a   : > { %p534_p11 = pneg %p533_p5  ;;  %p540_p7 = por %p539_p4, %p538_p9 }
  0x2c   : > { %p541_p10 = pnand %p540_p7, %p534_p11 }
  0x2e   : > { %544 = shalt.err (!%p541_p10)
}
  0x2f   : > { %s664_s7 = smov 128   ;;  %s665_s8 = smov 8  }
  0x30   : > { %442 = dma.hbm_to_vmem [thread:$0]  (!%p765_p0), %s757_s30, 256, %s761_s4, %s134_s6, %s664_s7, %s664_s7, %s665_s8  }
  0x31   : > { %p175_p9 = scmp.lt.s32.totalorder %s661_s14, 3  ;;  %s807_s18 = scalar_lea.hbm %s920_s1, %s431_s27 }
  0x32   : > { %p929_p11 = scmp.ge.s32.totalorder %s661_s14, 1  ;;  %s159_s20 = scalar_lea.vmem [#allocation5], %s416_s26 }
  0x33   : > { %s167_s28 = sshll.u32 %s159_s20, 4  ;;  %s156_s30 = scalar_lea.sflag [#allocation6], %s748_s25  ;;  %s817_s28 = int_to_ptr.vmem [resolvable:$true] %s167_s28 }
  0x34   : > { %p811_p12 = pnand %p929_p11, %p175_p9  ;;  %s545_s4 = scalar_lea.hbm %s807_s18, 256 }
  0x35   : > { %p546_p1 = scmp.ne.s32.totalorder %s807_s18, %s545_s4  ;;  %s550_s29 = scalar_lea.hbm %s920_s1, 512 }
  0x36   : > { %p551_p2 = scmp.lt.u32.totalorder %s807_s18, %s920_s1  ;;  %p552_p5 = scmp.lt.u32.totalorder %s550_s29, %s545_s4 }
  0x37   : > { %p548_p6 = pnand %p546_p1, %p517_p3  ;;  %p554_p7 = scmp.lt.u32.totalorder %s545_s4, %s807_s18 }
  0x38   : > { %p553_p4 = por %p552_p5, %p551_p2 }
  0x39   : > { %p549_p13 = pneg %p548_p6 }
  0x3a   : > { %p555_p10 = por %p554_p7, %p553_p4 }
  0x3c   : > { %p556_p9 = pnand %p555_p10, %p549_p13 }
  0x3e   : > { %559 = shalt.err (!%p556_p9)
}
  0x3f   : > { %s560_s26 = scalar_lea.vmem %s817_s28, 256  ;;  %s666_s16 = smov [#allocation5]  }
  0x40   : > { %p561_p11 = scmp.ne.s32.totalorder %s817_s28, %s560_s26  ;;  %s565_s20 = sshll.u32 %s666_s16, 4  ;;  %s566_s20 = int_to_ptr.vmem [resolvable:$false] %s565_s20 }
  0x41   : > { %s567_s27 = scalar_lea.vmem %s566_s20, 512  ;;  %p568_p8 = scmp.lt.s32.totalorder %s817_s28, %s566_s20 }
  0x42   : > { %p563_p1 = pnand %p561_p11, %p517_p3  ;;  %p569_p2 = scmp.lt.s32.totalorder %s567_s27, %s560_s26 }
  0x44   : > { %p564_p6 = pneg %p563_p1  ;;  %p570_p5 = por %p569_p2, %p568_p8 }
  0x46   : > { %p571_p4 = pnand %p570_p5, %p564_p6 }
  0x48   : > { %574 = shalt.err (!%p571_p4)
}
  0x49   : > { %445 = dma.hbm_to_vmem [thread:$0]  (!%p765_p0), %s807_s18, 256, %s817_s28, %s156_s30, %s664_s7, %s664_s7, %s665_s8  }
  0x4a   : > { %179 = sbr.rel (%p811_p12) target bundleno = 159 (0x9f), region = 28  ;;  %s851_s4 = sand.u32 (!%p811_p12), 1, %s645_s10  }
  0x4b   : > { %s423_s6 = sshll.u32 (!%p811_p12), %s851_s4, 4  ;;  %s182_s29 = scalar_lea.sflag (!%p811_p12), [#allocation3], %s851_s4 }
  0x4c   : > { %s185_s5 = scalar_lea.vmem (!%p811_p12), [#allocation2], %s423_s6  ;;  %p931_p8 = scmp.ne.s32.totalorder (!%p811_p12), %s925_s21, 0 }
  0x51   : > { %628 = dma.done.wait (%p931_p8), %s182_s29, 256  }
  0x52   : > { %630 = vsyncadd (%p931_p8), %s182_s29, 4294967040  ;;  %s191_s25 = scalar_lea.sflag [#allocation6], %s851_s4  ;;  %s194_s7 = scalar_lea.vmem [#allocation5], %s423_s6 }
  0x53   : > { %632 = dma.done.wait (%p931_p8), %s191_s25, 256  }
  0x54   : > { %634 = vsyncadd (%p931_p8), %s191_s25, 4294967040  ;;  %v229_v0 = vld [vmem:[%s185_s5] sm:$0xff]  ;;  %v230_v1 = vld [vmem:[%s185_s5 + $0x8] sm:$0xff]  ;;  %v281_v40 = vlaneseq  ;;  %s426_s21 = sshll.u32 %s653_s12, 4  ;;  %s425_s8 = sshll.u32 %s851_s4, 3 }
  0x55   : > { %v239_v2 = vand.u32 2147483647, %v229_v0  ;;  %v240_v3 = vand.u32 2147483647, %v230_v1  ;;  %v231_v14 = vld [vmem:[%s194_s7] sm:$0xff]  ;;  %v232_v15 = vld [vmem:[%s194_s7 + $0x8] sm:$0xff]  ;;  %v284_v43 = vstv %s426_s21 }
  0x56   : > { %v233_v17 = vmax.f32 %v229_v0, 0.0  ;;  %v235_v18 = vmul.f32 %v231_v14, %v229_v0  ;;  %v234_v21 = vmax.f32 %v230_v1, 0.0  ;;  %v236_v22 = vmul.f32 %v232_v15, %v230_v1  ;;  %s428_s18 = sshll.u32 %s653_s12, 7  ;;  %s219_s19 = scalar_lea.vmem [#allocation7], %s425_s8 }
  0x57   : > { %v241_v4 = vsub.f32 0.0, %v239_v2  ;;  %v242_v5 = vsub.f32 0.0, %v240_v3  ;;  %v282_v41 = vshrl.u32 %v281_v40, 7  ;;  %s309_s28 = sshll.u32 %s219_s19, 4  ;;  %s870_s15 = scalar_lea.hbm %s921_s2, %s428_s18  ;;  %s872_s28 = int_to_ptr.vmem [resolvable:$true] %s309_s28 }
  0x58   : > { %v237_v26 = vsub.f32 %v233_v17, %v235_v18  ;;  %v238_v29 = vsub.f32 %v234_v21, %v236_v22  ;;  %s296_s26 = scalar_lea.sflag [#allocation4], %s851_s4  ;;  %s575_s16 = scalar_lea.vmem %s872_s28, 128 }
  0x59   : > { %v243_v6 = vmul.f32 1.442695, %v241_v4  ;;  %v245_v7 = vmul.f32 1.442695, %v242_v5  ;;  %v283_v42 = vadd.s32 8, %v282_v41  ;;  %v285_v45 = vadd.s32 %v284_v43, %v282_v41  ;;  %p576_p0 = scmp.ne.s32.totalorder %s872_s28, %s575_s16  ;;  %p932_p3 = scmp.ne.s32.totalorder %s926_s22, 0 }
  0x5a   : > { %s667_s12 = smov [#allocation7]  }
  0x5b   : > { %503 = vpow2.f32 %v243_v6  ;;  %v286_v48 = vadd.s32 %v284_v43, %v283_v42  ;;  %vm287_vm2 = vcmp.lt.s32.totalorder %v285_v45, 16  ;;  %p577_p12 = pnand %p576_p0, %p932_p3  ;;  %s579_s20 = sshll.u32 %s667_s12, 4  ;;  %s580_s20 = int_to_ptr.vmem [resolvable:$false] %s579_s20 }
  0x5c   : > { %505 = vpow2.f32 %v245_v7  ;;  %s581_s27 = scalar_lea.vmem %s580_s20, 256  ;;  %p582_p7 = scmp.lt.s32.totalorder %s872_s28, %s580_s20 }
  0x5d   : > { %vm288_vm3 = vcmp.lt.s32.totalorder %v286_v48, 16  ;;  %p578_p13 = pneg %p577_p12  ;;  %p583_p10 = scmp.lt.s32.totalorder %s581_s27, %s575_s16 }
  0x5f   : > { %p584_p9 = por %p583_p10, %p582_p7 }
  0x61   : > { %p585_p11 = pnand %p584_p9, %p578_p13 }
  0x65   : > { %v504_v8 = vpop.eup %503 }
  0x66   : > { %v506_v9 = vpop.eup %505  ;;  %v247_v10 = vadd.f32 1.0, %v504_v8  ;;  %v250_v12 = vmul.f32 -0.5, %v504_v8  ;;  %v253_v19 = vand.u32 2147483647, %v504_v8 }
  0x67   : > { %v256_v11 = vadd.f32 1.0, %v506_v9  ;;  %v259_v13 = vmul.f32 -0.5, %v506_v9  ;;  %v262_v23 = vand.u32 2147483647, %v506_v9 }
  0x68   : > { %507 = vlog2.f32 %v247_v10  ;;  %v251_v16 = vadd.f32 1.0, %v250_v12  ;;  %vm254_vm0 = vcmp.lt.f32.partialorder %v253_v19, 0.0004427343 }
  0x69   : > { %509 = vlog2.f32 %v256_v11  ;;  %v260_v20 = vadd.f32 1.0, %v259_v13  ;;  %vm263_vm1 = vcmp.lt.f32.partialorder %v262_v23, 0.0004427343 }
  0x6a   : > { %v252_v24 = vmul.f32 %v504_v8, %v251_v16 }
  0x6b   : > { %v261_v27 = vmul.f32 %v506_v9, %v260_v20 }
  0x72   : > { %v508_v25 = vpop.eup %507 }
  0x73   : > { %v510_v28 = vpop.eup %509  ;;  %v249_v30 = vmul.f32 0.6931472, %v508_v25 }
  0x74   : > { %v258_v31 = vmul.f32 0.6931472, %v510_v28 }
  0x75   : > { %v255_v32 = vsel %vm254_vm0, %v252_v24, %v249_v30 }
  0x76   : > { %v264_v33 = vsel %vm263_vm1, %v261_v27, %v258_v31  ;;  %v265_v34 = vadd.f32 %v255_v32, %v237_v26 }
  0x77   : > { %v266_v35 = vadd.f32 %v264_v33, %v238_v29 }
  0x78   : > { %v267_v36 = vsub.f32 0.0, %v265_v34 }
  0x79   : > { %v268_v37 = vsub.f32 0.0, %v266_v35 }
  0x7a   : > { %v269_v38 = vmul.f32 1.442695, %v267_v36 }
  0x7b   : > { %v271_v39 = vmul.f32 1.442695, %v268_v37 }
  0x7c   : > { %511 = vpow2.f32 %v269_v38 }
  0x7d   : > { %513 = vpow2.f32 %v271_v39 }
  0x86   : > { %v512_v44 = vpop.eup %511 }
  0x87   : > { %v514_v46 = vpop.eup %513  ;;  %v273_v47 = vsub.f32 1.0, %v512_v44 }
  0x88   : > { %v274_v49 = vsub.f32 1.0, %v514_v46 }
  0x89   : > { %v275_v50 = vmul.f32 %v273_v47, %v273_v47 }
  0x8a   : > { %v276_v51 = vmul.f32 %v274_v49, %v274_v49 }
  0x8b   : > { %v277_v52 = vmul.f32 %v275_v50, %v265_v34 }
  0x8c   : > { %v278_v53 = vmul.f32 %v276_v51, %v266_v35 }
  0x8d   : > { %v289_v54 = vsel %vm287_vm2, %v277_v52, 0.0 }
  0x8e   : > { %v290_v55 = vsel %vm288_vm3, %v278_v53, 0.0 }
  0x8f   : > { %v291_v56 = vadd.f32 %v290_v55, %v289_v54 }
  0x91   : > { %294 = vst [vmem:[%s219_s19] sm:$0xff] %v291_v56 }
  0x92   : > { %588 = shalt.err (!%p585_p11)
}
  0x93   : > { %s589_s4 = scalar_lea.hbm %s870_s15, 128  ;;  %s593_s5 = scalar_lea.hbm %s921_s2, 256 }
  0x94   : > { %p590_p1 = scmp.ne.s32.totalorder %s870_s15, %s589_s4  ;;  %p594_p5 = scmp.lt.u32.totalorder %s870_s15, %s921_s2 }
  0x95   : > { %p595_p4 = scmp.lt.u32.totalorder %s593_s5, %s589_s4  ;;  %p597_p0 = scmp.lt.u32.totalorder %s589_s4, %s870_s15 }
  0x96   : > { %p591_p6 = pnand %p590_p1, %p932_p3 }
  0x97   : > { %p596_p8 = por %p595_p4, %p594_p5 }
  0x98   : > { %p592_p2 = pneg %p591_p6 }
  0x99   : > { %p598_p12 = por %p597_p0, %p596_p8 }
  0x9b   : > { %p599_p13 = pnand %p598_p12, %p592_p2 }
  0x9d   : > { %602 = shalt.err (!%p599_p13)
}
  0x9e   : > { %437 = dma.vmem_to_hbm [thread:$0]  (%p932_p3), %s872_s28, 128, %s870_s15, %s296_s26  }
  0x9f PF: > { %s321_s21 = sand.u32 1, %s641_s9   ;;  %p933_p7 = scmp.ne.s32.totalorder %s927_s24, 0 }
  0xa0   : > { %p934_p10 = scmp.ge.s32.totalorder %s661_s14, 2  ;;  %s322_s8 = scalar_lea.sflag [#allocation4], %s321_s21 }
  0xa2   : > { %p447_p9 = pnand %p934_p10, %p933_p7 }
  0xa4   : > { %636 = dma.done.wait (!%p447_p9), %s322_s8, 128  }
  0xa5   : > { %638 = vsyncadd (!%p447_p9), %s322_s8, 4294967168  ;;  %s21_s14 = sadd.s32 1, %s661_s14   ;;  %s935_s9 = smov %s645_s10 }
  0xa6   : > { %p18_p11 = scmp.ge.s32.totalorder %s21_s14, 4   ;;  %s936_s10 = smov %s649_s11 }
  0xa7   : > { %s937_s11 = smov %s739_s23  ;;  %s938_s12 = smov %s657_s13 }
  0xa8   : > { %s939_s13 = smov %s941_s17  ;;  %20 = sbr.rel (!%p18_p11) target bundleno = 8 (0x8), region = 90 }
  0xaf   :  { %327 = vsyncpa [#allocation3], 1 }
  0xb0   :  { %329 = vsyncpa [#allocation3 + $0x1], 1 }
  0xb1   :  { %330 = vsyncpa [#allocation6], 1 }
  0xb2   :  { %332 = vsyncpa [#allocation6 + $0x1], 1 }
  0xb3   :  { %333 = vsyncpa [#allocation4], 1 }
  0xb4   :  { %335 = vsyncpa [#allocation4 + $0x1], 1 }

</bundles_post_ra>
